<compile_context>
chip_gen: v5e
topology: v5e:2x2
jax: 0.10.0
libtpu: 0.0.40
codegen_flags: <defaults>
</compile_context>

<pallas_src>
import jax
import jax.numpy as jnp
from jax.experimental import pallas as pl
from jax.experimental.pallas import tpu as pltpu

F_IN, H, F_OUT = 15, 70, 1
MAX_TB = 1024  # rows per grid step (batch tile)


def _mlp_kernel(x_ref, w1_ref, b1_ref, w2_ref, b2_ref,
                w3_ref, b3_ref, w4_ref, b4_ref, o_ref):
    # Layers 1-3: bf16 x bf16 -> f32 on the MXU, bias + ReLU in f32 on the VPU.
    x = x_ref[...].astype(jnp.bfloat16)                               # (TB, 15)
    h = jnp.dot(x, w1_ref[...], preferred_element_type=jnp.float32)   # (TB, 70)
    h = jnp.maximum(h + b1_ref[...], 0.0)

    h = jnp.dot(h.astype(jnp.bfloat16), w2_ref[...],
                preferred_element_type=jnp.float32)
    h = jnp.maximum(h + b2_ref[...], 0.0)

    h = jnp.dot(h.astype(jnp.bfloat16), w3_ref[...],
                preferred_element_type=jnp.float32)
    h = jnp.maximum(h + b3_ref[...], 0.0)

    # Layer 4 (70 -> 1 head): keep f32 for precision; cost is negligible.
    h = jnp.dot(h, w4_ref[...], preferred_element_type=jnp.float32)   # (TB, 1)
    o_ref[...] = (h + b4_ref[...]).astype(o_ref.dtype)


def prepare_params(params):
    """One-time param prep (outside the per-call jit): bf16 weights for the
    hidden layers, f32 head, biases reshaped to (1, n) for in-kernel broadcast."""
    (w1, b1), (w2, b2), (w3, b3), (w4, b4) = params
    return (
        w1.astype(jnp.bfloat16), b1.reshape(1, -1).astype(jnp.float32),
        w2.astype(jnp.bfloat16), b2.reshape(1, -1).astype(jnp.float32),
        w3.astype(jnp.bfloat16), b3.reshape(1, -1).astype(jnp.float32),
        w4.astype(jnp.float32),  b4.reshape(1, -1).astype(jnp.float32),
    )


@jax.jit
def track_analysis_forward(x, prepared):
    """x: (B, 15) float32 -> (B, 1) float32."""
    w1, b1, w2, b2, w3, b3, w4, b4 = prepared
    B = x.shape[0]
    Bp8 = max(8, ((B + 7) // 8) * 8)        # sublane-pad batch
    TB = min(MAX_TB, Bp8)                   # batch tile, multiple of 8
    nb = pl.cdiv(Bp8, TB)
    Bp = nb * TB

    xp = x.astype(jnp.float32)
    if Bp != B:
        # Zero rows are harmless: their outputs are sliced away below.
        xp = jnp.pad(xp, ((0, Bp - B), (0, 0)))

    x_spec = pl.BlockSpec((TB, F_IN), lambda i: (i, 0))
    o_spec = pl.BlockSpec((TB, F_OUT), lambda i: (i, 0))
    # Weights/biases: constant block index -> fetched once, VMEM-resident
    # across all batch tiles.
    const = lambda shape: pl.BlockSpec(shape, lambda i: (0, 0))

    out = pl.pallas_call(
        _mlp_kernel,
        out_shape=jax.ShapeDtypeStruct((Bp, F_OUT), jnp.float32),
        grid_spec=pltpu.PrefetchScalarGridSpec(
            num_scalar_prefetch=0,
            grid=(nb,),
            in_specs=[
                x_spec,
                const((F_IN, H)), const((1, H)),      # layer 1
                const((H, H)),    const((1, H)),      # layer 2
                const((H, H)),    const((1, H)),      # layer 3
                const((H, F_OUT)), const((1, F_OUT)),  # layer 4
            ],
            out_specs=o_spec,
        ),
        compiler_params=pltpu.CompilerParams(
            dimension_semantics=("parallel",)),
    )(xp, w1, b1, w2, b2, w3, b3, w4, b4)

    return out[:B]


def init_params(key):
    """Deterministic init mirroring torch.nn.Linear default (U[-1/sqrt(fan_in), +])."""
    dims = [(F_IN, H), (H, H), (H, H), (H, F_OUT)]
    params = []
    for i, (fan_in, fan_out) in enumerate(dims):
        kw, kb = jax.random.split(jax.random.fold_in(key, i))
        bound = 1.0 / jnp.sqrt(jnp.float32(fan_in))
        # stored as (in, out) so the kernel computes x @ W (== x @ W_torch.T)
        w = jax.random.uniform(kw, (fan_in, fan_out), jnp.float32, -bound, bound)
        b = jax.random.uniform(kb, (fan_out,), jnp.float32, -bound, bound)
        params.append((w, b))
    return tuple(params)


def _reference(x, params):
    h = x
    for i, (w, b) in enumerate(params):
        h = h @ w + b
        if i < 3:
            h = jnp.maximum(h, 0.0)
    return h


if __name__ == "__main__":
    key = jax.random.PRNGKey(0)
    params = init_params(key)
    prepared = prepare_params(params)

    # Small-batch check (single tile, TB=8).
    x_small = jax.random.normal(jax.random.fold_in(key, 100), (8, F_IN), jnp.float32)
    out_small = jax.block_until_ready(track_analysis_forward(x_small, prepared))
    ref_small = _reference(x_small, params)
    assert out_small.shape == (8, F_OUT), out_small.shape
    # bf16 MXU inputs (f32 accumulation) -> loosen tolerance vs f32 reference.
    assert jnp.allclose(out_small, ref_small, atol=2e-2, rtol=2e-2), (out_small, ref_small)

    # Multi-tile check (exercises the batch grid, pipelining and padding path).
    x_big = jax.random.normal(jax.random.fold_in(key, 200), (2500, F_IN), jnp.float32)
    out_big = jax.block_until_ready(track_analysis_forward(x_big, prepared))
    ref_big = _reference(x_big, params)
    assert out_big.shape == (2500, F_OUT), out_big.shape
    assert jnp.allclose(out_big, ref_big, atol=2e-2, rtol=2e-2)

    print("KERNEL_OK")
</pallas_src>

<mosaic_0001>
module attributes {stable_mosaic.version = 11 : i64} {
  func.func @_mlp_kernel(%arg0: i32, %arg1: memref<8x15xf32, #tpu.memory_space<vmem>>, %arg2: memref<15x70xbf16, #tpu.memory_space<vmem>>, %arg3: memref<1x70xf32, #tpu.memory_space<vmem>>, %arg4: memref<70x70xbf16, #tpu.memory_space<vmem>>, %arg5: memref<1x70xf32, #tpu.memory_space<vmem>>, %arg6: memref<70x70xbf16, #tpu.memory_space<vmem>>, %arg7: memref<1x70xf32, #tpu.memory_space<vmem>>, %arg8: memref<70x1xf32, #tpu.memory_space<vmem>>, %arg9: memref<1x1xf32, #tpu.memory_space<vmem>>, %arg10: memref<8x1xf32, #tpu.memory_space<vmem>>) attributes {dimension_semantics = [#tpu.dimension_semantics<parallel>], iteration_bounds = array<i64: 1>, scalar_prefetch = 0 : i64, scratch_operands = 0 : i64, tpu.core_type = #tpu.core_type<tc>, window_params = [{transform_indices = @transform_0, window_bounds = array<i64: 8, 15>}, {pipeline_mode = #tpu.pipeline_mode<synchronous>, transform_indices = @transform_1, window_bounds = array<i64: 15, 70>}, {pipeline_mode = #tpu.pipeline_mode<synchronous>, transform_indices = @transform_2, window_bounds = array<i64: 1, 70>}, {pipeline_mode = #tpu.pipeline_mode<synchronous>, transform_indices = @transform_3, window_bounds = array<i64: 70, 70>}, {pipeline_mode = #tpu.pipeline_mode<synchronous>, transform_indices = @transform_4, window_bounds = array<i64: 1, 70>}, {pipeline_mode = #tpu.pipeline_mode<synchronous>, transform_indices = @transform_5, window_bounds = array<i64: 70, 70>}, {pipeline_mode = #tpu.pipeline_mode<synchronous>, transform_indices = @transform_6, window_bounds = array<i64: 1, 70>}, {pipeline_mode = #tpu.pipeline_mode<synchronous>, transform_indices = @transform_7, window_bounds = array<i64: 70, 1>}, {pipeline_mode = #tpu.pipeline_mode<synchronous>, transform_indices = @transform_8, window_bounds = array<i64: 1, 1>}, {transform_indices = @transform_9, window_bounds = array<i64: 8, 1>}]} {
    %c0 = arith.constant 0 : index
    %c0_0 = arith.constant 0 : index
    %0 = vector.load %arg1[%c0, %c0_0] : memref<8x15xf32, #tpu.memory_space<vmem>>, vector<8x15xf32>
    %1 = arith.truncf %0 : vector<8x15xf32> to vector<8x15xbf16>
    %c0_1 = arith.constant 0 : index
    %c0_2 = arith.constant 0 : index
    %2 = vector.load %arg2[%c0_1, %c0_2] : memref<15x70xbf16, #tpu.memory_space<vmem>>, vector<15x70xbf16>
    %cst = arith.constant dense<0.000000e+00> : vector<8x70xf32>
    %3 = tpu.matmul %1, %2, %cst {dimension_numbers = #tpu.dot_dimension_numbers<[1], [0], [0], [1], [0, 0, 1, 1], [], []>} : vector<8x15xbf16>, vector<15x70xbf16>, vector<8x70xf32> -> vector<8x70xf32>
    %c0_3 = arith.constant 0 : index
    %c0_4 = arith.constant 0 : index
    %4 = vector.load %arg3[%c0_3, %c0_4] : memref<1x70xf32, #tpu.memory_space<vmem>>, vector<1x70xf32>
    %5 = vector.broadcast %4 : vector<1x70xf32> to vector<8x70xf32>
    %6 = arith.addf %3, %5 : vector<8x70xf32>
    %cst_5 = arith.constant 0.000000e+00 : f32
    %7 = vector.broadcast %cst_5 : f32 to vector<8x70xf32>
    %8 = arith.maximumf %6, %7 : vector<8x70xf32>
    %9 = arith.truncf %8 : vector<8x70xf32> to vector<8x70xbf16>
    %c0_6 = arith.constant 0 : index
    %c0_7 = arith.constant 0 : index
    %10 = vector.load %arg4[%c0_6, %c0_7] : memref<70x70xbf16, #tpu.memory_space<vmem>>, vector<70x70xbf16>
    %cst_8 = arith.constant dense<0.000000e+00> : vector<8x70xf32>
    %11 = tpu.matmul %9, %10, %cst_8 {dimension_numbers = #tpu.dot_dimension_numbers<[1], [0], [0], [1], [0, 0, 1, 1], [], []>} : vector<8x70xbf16>, vector<70x70xbf16>, vector<8x70xf32> -> vector<8x70xf32>
    %c0_9 = arith.constant 0 : index
    %c0_10 = arith.constant 0 : index
    %12 = vector.load %arg5[%c0_9, %c0_10] : memref<1x70xf32, #tpu.memory_space<vmem>>, vector<1x70xf32>
    %13 = vector.broadcast %12 : vector<1x70xf32> to vector<8x70xf32>
    %14 = arith.addf %11, %13 : vector<8x70xf32>
    %cst_11 = arith.constant 0.000000e+00 : f32
    %15 = vector.broadcast %cst_11 : f32 to vector<8x70xf32>
    %16 = arith.maximumf %14, %15 : vector<8x70xf32>
    %17 = arith.truncf %16 : vector<8x70xf32> to vector<8x70xbf16>
    %c0_12 = arith.constant 0 : index
    %c0_13 = arith.constant 0 : index
    %18 = vector.load %arg6[%c0_12, %c0_13] : memref<70x70xbf16, #tpu.memory_space<vmem>>, vector<70x70xbf16>
    %cst_14 = arith.constant dense<0.000000e+00> : vector<8x70xf32>
    %19 = tpu.matmul %17, %18, %cst_14 {dimension_numbers = #tpu.dot_dimension_numbers<[1], [0], [0], [1], [0, 0, 1, 1], [], []>} : vector<8x70xbf16>, vector<70x70xbf16>, vector<8x70xf32> -> vector<8x70xf32>
    %c0_15 = arith.constant 0 : index
    %c0_16 = arith.constant 0 : index
    %20 = vector.load %arg7[%c0_15, %c0_16] : memref<1x70xf32, #tpu.memory_space<vmem>>, vector<1x70xf32>
    %21 = vector.broadcast %20 : vector<1x70xf32> to vector<8x70xf32>
    %22 = arith.addf %19, %21 : vector<8x70xf32>
    %cst_17 = arith.constant 0.000000e+00 : f32
    %23 = vector.broadcast %cst_17 : f32 to vector<8x70xf32>
    %24 = arith.maximumf %22, %23 : vector<8x70xf32>
    %c0_18 = arith.constant 0 : index
    %c0_19 = arith.constant 0 : index
    %25 = vector.load %arg8[%c0_18, %c0_19] : memref<70x1xf32, #tpu.memory_space<vmem>>, vector<70x1xf32>
    %cst_20 = arith.constant dense<0.000000e+00> : vector<8x1xf32>
    %26 = tpu.matmul %24, %25, %cst_20 {dimension_numbers = #tpu.dot_dimension_numbers<[1], [0], [0], [1], [0, 0, 1, 1], [], []>} : vector<8x70xf32>, vector<70x1xf32>, vector<8x1xf32> -> vector<8x1xf32>
    %c0_21 = arith.constant 0 : index
    %c0_22 = arith.constant 0 : index
    %27 = vector.load %arg9[%c0_21, %c0_22] : memref<1x1xf32, #tpu.memory_space<vmem>>, vector<1x1xf32>
    %28 = vector.broadcast %27 : vector<1x1xf32> to vector<8x1xf32>
    %29 = arith.addf %26, %28 : vector<8x1xf32>
    %c0_23 = arith.constant 0 : index
    %c0_24 = arith.constant 0 : index
    %30 = vector.load %arg10[%c0_23, %c0_24] : memref<8x1xf32, #tpu.memory_space<vmem>>, vector<8x1xf32>
    tpu.vector_store %arg10[%c0_23, %c0_24], %29 {strides = array<i32>} : memref<8x1xf32, #tpu.memory_space<vmem>>, vector<8x1xf32>,
    return
  }
  func.func @transform_0(%arg0: i32) -> (i32, i32) {
    %c0_i32 = arith.constant 0 : i32
    %c0_i32_0 = arith.constant 0 : i32
    return %arg0, %c0_i32 : i32, i32
  }
  func.func @transform_1(%arg0: i32) -> (i32, i32) {
    %c0_i32 = arith.constant 0 : i32
    %c0_i32_0 = arith.constant 0 : i32
    %c0_i32_1 = arith.constant 0 : i32
    return %c0_i32, %c0_i32_0 : i32, i32
  }
  func.func @transform_2(%arg0: i32) -> (i32, i32) {
    %c0_i32 = arith.constant 0 : i32
    %c0_i32_0 = arith.constant 0 : i32
    %c0_i32_1 = arith.constant 0 : i32
    return %c0_i32, %c0_i32_0 : i32, i32
  }
  func.func @transform_3(%arg0: i32) -> (i32, i32) {
    %c0_i32 = arith.constant 0 : i32
    %c0_i32_0 = arith.constant 0 : i32
    %c0_i32_1 = arith.constant 0 : i32
    return %c0_i32, %c0_i32_0 : i32, i32
  }
  func.func @transform_4(%arg0: i32) -> (i32, i32) {
    %c0_i32 = arith.constant 0 : i32
    %c0_i32_0 = arith.constant 0 : i32
    %c0_i32_1 = arith.constant 0 : i32
    return %c0_i32, %c0_i32_0 : i32, i32
  }
  func.func @transform_5(%arg0: i32) -> (i32, i32) {
    %c0_i32 = arith.constant 0 : i32
    %c0_i32_0 = arith.constant 0 : i32
    %c0_i32_1 = arith.constant 0 : i32
    return %c0_i32, %c0_i32_0 : i32, i32
  }
  func.func @transform_6(%arg0: i32) -> (i32, i32) {
    %c0_i32 = arith.constant 0 : i32
    %c0_i32_0 = arith.constant 0 : i32
    %c0_i32_1 = arith.constant 0 : i32
    return %c0_i32, %c0_i32_0 : i32, i32
  }
  func.func @transform_7(%arg0: i32) -> (i32, i32) {
    %c0_i32 = arith.constant 0 : i32
    %c0_i32_0 = arith.constant 0 : i32
    %c0_i32_1 = arith.constant 0 : i32
    return %c0_i32, %c0_i32_0 : i32, i32
  }
  func.func @transform_8(%arg0: i32) -> (i32, i32) {
    %c0_i32 = arith.constant 0 : i32
    %c0_i32_0 = arith.constant 0 : i32
    %c0_i32_1 = arith.constant 0 : i32
    return %c0_i32, %c0_i32_0 : i32, i32
  }
  func.func @transform_9(%arg0: i32) -> (i32, i32) {
    %c0_i32 = arith.constant 0 : i32
    %c0_i32_0 = arith.constant 0 : i32
    return %arg0, %c0_i32 : i32, i32
  }
}

</mosaic_0001>

<bundles_post_ra>
// kernel: track_analysis_forward.1
= control target key start
LH: loop header
LB: loop body
LE: loop exit
PB: predicated region body
PF: predicated region fallthrough
CT: control target
= control target key end

     0   :  { %s524_s0 = inlined_call_operand.hbm [shape: f32[8,15], index: 0, kind: input, shape index: {}]   ;;  %s525_s1 = inlined_call_operand.hbm [shape: bf16[15,70], index: 1, kind: input, shape index: {}]   ;;  %s526_s2 = inlined_call_operand.vmem [shape: f32[1,70], index: 2, kind: input, shape index: {}]   ;;  %s527_s3 = inlined_call_operand.vmem [shape: bf16[70,70], index: 3, kind: input, shape index: {}]   ;;  %s528_s4 = inlined_call_operand.vmem [shape: f32[1,70], index: 4, kind: input, shape index: {}]   ;;  %s529_s5 = inlined_call_operand.vmem [shape: bf16[70,70], index: 5, kind: input, shape index: {}]   ;;  %s530_s6 = inlined_call_operand.vmem [shape: f32[1,70], index: 6, kind: input, shape index: {}]   ;;  %s531_s7 = inlined_call_operand.vmem [shape: f32[70,1], index: 7, kind: input, shape index: {}]   ;;  %s532_s8 = inlined_call_operand.<no memory space> [shape: f32[1,1], index: 8, kind: input, shape index: {}]   ;;  %s533_s9 = inlined_call_operand.vmem [shape: f32[8,1], index: 9, kind: output, shape index: {}]  }
   0x1   :  { %v14_v0 = vstv %s532_s8 }
   0x2   :  { %15 = vst [vmem:[#allocation2] sm:$0x1] %v14_v0 }
   0x3   :  { %16 = vsyncpa [#allocation4], 0  ;;  %s23_s13 = sshll.u32 %s524_s0, 4  ;;  %s24_s13 = int_to_ptr.hbm [resolvable:$true] %s23_s13 }
   0x4   :  { %17 = vsyncpa [#allocation6], 0  ;;  %s386_s14 = smov [#allocation3]   ;;  %s33_s18 = sshll.u32 %s525_s1, 4  ;;  %s34_s18 = int_to_ptr.hbm [resolvable:$true] %s33_s18 }
   0x5   :  { %s25_s15 = sshll.u32 %s386_s14, 4  ;;  %s387_s19 = smov [#allocation5]   ;;  %s26_s15 = int_to_ptr.vmem [resolvable:$true] %s25_s15 }
   0x6   :  { %28 = dma.hbm_to_vmem [thread:$0]  %s24_s13, 128, %s26_s15, [#allocation4]  }
   0x7   :  { %s35_s20 = sshll.u32 %s387_s19, 4  ;;  %s388_s8 = smov 64   ;;  %s36_s20 = int_to_ptr.vmem [resolvable:$true] %s35_s20 }
   0x8   :  { %s389_s21 = smov 4  }
   0x9   :  { %41 = dma.hbm_to_vmem [thread:$0]  %s34_s18, 128, %s36_s20, [#allocation6], %s388_s8, %s388_s8, %s389_s21  }
   0xa   :  { %382 = dma.done.wait [#allocation4], 128  }
   0xb   :  { %383 = vsyncadd [#allocation4], 4294967168 }
   0xc   :  { %384 = dma.done.wait [#allocation6], 128  }
   0xd   :  { %385 = vsyncadd [#allocation6], 4294967168  ;;  %vm82_vm0 = vcmask 1046528   ;;  %vm83_vm1 = vcmask 1047552   ;;  %v390_v1 = vmov 65535   ;;  %v316_v4 = vld [vmem:[#allocation5] sm:$0xff] }
   0xe   :  { %v84_v2 = vsel %vm82_vm0, 4294967295, %v390_v1  ;;  %v65_v5 = vld [vmem:[#allocation3] sm:$0xff]  ;;  %vm148_vm2 = vcmask 1042432   ;;  %vm78_vm3 = vcmask 121856   ;;  %v320_v12 = vld [vmem:[%s527_s3 + $0x18] sm:$0xff]  ;;  %v319_v13 = vld [vmem:[%s527_s3 + $0x10] sm:$0xff] }
   0xf   :  { %v85_v3 = vsel %vm83_vm1, %v84_v2, 0  ;;  %v112_v6 = vld [vmem:[%s527_s3 + $0x20] sm:$0x7]  ;;  %v66_v9 = vpack.c.bf16 %v65_v5, %v65_v5  ;;  %v318_v14 = vld [vmem:[%s527_s3 + $0x8] sm:$0xff]  ;;  %v324_v20 = vld [vmem:[%s529_s5 + $0x18] sm:$0xff]  ;;  %vm144_vm4 = vcmask 572416  }
  0x10   :  { %v134_v7 = vunpack.c.l.b16 %v112_v6  ;;  %v87_v8 = vand.u32 %v316_v4, %v85_v3  ;;  %v317_v15 = vld [vmem:[%s527_s3] sm:$0xff]  ;;  %v323_v21 = vld [vmem:[%s529_s5 + $0x10] sm:$0xff]  ;;  %v322_v28 = vld [vmem:[%s529_s5 + $0x8] sm:$0xff]  ;;  %vm243_vm5 = vcmask 1045504   ;;  %vm267_vm6 = vcmask 7168  }
  0x11   :  { %v175_v16 = vld [vmem:[%s529_s5 + $0x20] sm:$0x7]  ;;  %v234_v31 = vld [vmem:[%s531_s7 + $0x38] sm:$0xff]  ;;  %v233_v32 = vld [vmem:[%s531_s7 + $0x30] sm:$0xff] }
  0x12   :  { %v139_v10 = vpack.c.b16 %v134_v7, %v134_v7  ;;  %96 = vmatpush.bf16.msra.mxu0 %v87_v8  ;;  %v197_v17 = vunpack.c.l.b16 %v175_v16  ;;  %v330_v22 = vld [vmem:[%s526_s2] ss:$0 sm:$0xff]  ;;  %v232_v33 = vld [vmem:[%s531_s7 + $0x28] sm:$0xff]  ;;  %v230_v35 = vld [vmem:[%s531_s7 + $0x18] sm:$0xff] }
  0x13   :  { %v321_v29 = vld [vmem:[%s529_s5] sm:$0xff]  ;;  %v229_v42 = vld [vmem:[%s531_s7 + $0x10] sm:$0xff]  ;;  %v228_v43 = vld [vmem:[%s531_s7 + $0x8] sm:$0xff] }
  0x14   :  { %v150_v11 = vsel %vm148_vm2, %v139_v10, 0  ;;  %v202_v18 = vpack.c.b16 %v197_v17, %v197_v17  ;;  %v235_v30 = vld [vmem:[%s531_s7 + $0x40] sm:$0x3f] }
  0x15   :  { %155 = vmatpush.bf16.msra.mxu1 %v150_v11  ;;  %279 = vmatmul.msk.bf16.vlgmr.msra.gmra.mxu0 %vm78_vm3, %v66_v9  ;;  %v231_v34 = vld [vmem:[%s531_s7 + $0x20] sm:$0xff] }
  0x16   :  { %v211_v19 = vsel %vm148_vm2, %v202_v18, 0  ;;  %314 = vmatpush.msk.msra.mxu3 %vm243_vm5, %v235_v30  ;;  %v331_v36 = vld [vmem:[%s528_s4] ss:$0 sm:$0xff] }
  0x17   :  { %216 = vmatpush.bf16.msra.mxu2 %v211_v19  ;;  %v227_v44 = vld [vmem:[%s531_s7] sm:$0xff] }
  0x18   :  { %255 = vmatpush.msra.mxu3 %v234_v31  ;;  %v332_v45 = vld [vmem:[%s530_s6] ss:$0 sm:$0xff] }
  0x19   :  { %156 = vmatpush.bf16.msra.mxu1 %v320_v12  ;;  %v333_v50 = vld [vmem:[#allocation2] ss:$0 sm:$0xff] }
  0x1a   :  { %256 = vmatpush.msra.mxu3 %v233_v32 }
  0x1b   :  { %217 = vmatpush.bf16.msra.mxu2 %v324_v20 }
  0x1c   :  { %257 = vmatpush.msra.mxu3 %v232_v33 }
  0x1d   :  { %157 = vmatpush.bf16.msra.mxu1 %v319_v13 }
  0x1e   :  { %258 = vmatpush.msra.mxu3 %v231_v34 }
  0x1f   :  { %218 = vmatpush.bf16.msra.mxu2 %v323_v21 }
  0x20   :  { %259 = vmatpush.msra.mxu3 %v230_v35 }
  0x21   :  { %158 = vmatpush.bf16.msra.mxu1 %v318_v14 }
  0x22   :  { %260 = vmatpush.msra.mxu3 %v229_v42 }
  0x23   :  { %219 = vmatpush.bf16.msra.mxu2 %v322_v28 }
  0x24   :  { %261 = vmatpush.msra.mxu3 %v228_v43 }
  0x25   :  { %159 = vmatpush.bf16.msra.mxu1 %v317_v15 }
  0x26   :  { %262 = vmatpush.msra.mxu3 %v227_v44 }
  0x27   :  { %220 = vmatpush.bf16.msra.mxu2 %v321_v29 }
  0x92   :  { %v98_v23 = vpop.f32.mrf.mxu0 }
  0x93   :  { %v99_v24 = vadd.f32 %v330_v22, %v98_v23 }
  0x95   :  { %v102_v25 = vmax.f32 %v99_v24, 0.0 }
  0x97   :  { %v103_v26 = vpack.c.bf16 %v102_v25, %v102_v25 }
  0x99   :  { %296 = vmatmul.msk.bf16.vlgmr.msra.gmra.mxu1 %vm144_vm4, %v103_v26 }
  0x9a   :  { %v100_v27 = vpop.f32.mrf.mxu0 }
 0x116   :  { %v161_v37 = vpop.f32.mrf.mxu1 }
 0x117   :  { %v162_v38 = vadd.f32 %v331_v36, %v161_v37 }
 0x119   :  { %v165_v39 = vmax.f32 %v162_v38, 0.0 }
 0x11b   :  { %v166_v40 = vpack.c.bf16 %v165_v39, %v165_v39 }
 0x11d   :  { %313 = vmatmul.msk.bf16.vlgmr.msra.gmra.mxu2 %vm144_vm4, %v166_v40 }
 0x11e   :  { %v163_v41 = vpop.f32.mrf.mxu1 }
 0x1a0   :  { %v222_v46 = vpop.f32.mrf.mxu2 }
 0x1a1   :  { %v223_v47 = vadd.f32 %v332_v45, %v222_v46 }
 0x1a3   :  { %v226_v48 = vmax.f32 %v223_v47, 0.0 }
 0x1a5   :  { %315 = vmatmul.msk.f32.vlgmr.msra.gmra.mxu3 %vm144_vm4, %v226_v48 }
 0x1a8   :  { %v224_v49 = vpop.f32.mrf.mxu2 }
 0x228   :  { %v264_v51 = vpop.f32.mrf.mxu3 }
 0x229   :  { %v265_v52 = vadd.f32 %v333_v50, %v264_v51 }
 0x22b   :  { %268 = vst.msk [vmem:[%s533_s9] sm:$0xff] %vm267_vm6, %v265_v52 }
 0x22c   :  { %273 = vsyncpa [#allocation4], 1 }
 0x22d   :  { %274 = vsyncpa [#allocation6], 1 }

</bundles_post_ra>
